<compile_context>
chip_gen: v6e
topology: v6e:2x2x1
jax: 0.10.0
libtpu: 0.0.40
codegen_flags: <defaults>
</compile_context>

<pallas_src>
import functools

import jax
import jax.numpy as jnp
from jax.experimental import pallas as pl
from jax.experimental.pallas import tpu as pltpu

EPS = 1e-5


def _bn_stats_kernel(x_ref, gamma_ref, beta_ref, scale_ref, shift_ref,
                     sum_sc, ssq_sc, *, inv_count):
    # x_ref: (1, cb, lb)   gamma/beta/scale/shift: (cb, 1)   scratch: (cb, 1) f32
    n = pl.program_id(1)
    l = pl.program_id(2)

    @pl.when(jnp.logical_and(n == 0, l == 0))
    def _():
        sum_sc[...] = jnp.zeros_like(sum_sc)
        ssq_sc[...] = jnp.zeros_like(ssq_sc)

    x = x_ref[0].astype(jnp.float32)                       # (cb, lb)
    sum_sc[...] += jnp.sum(x, axis=1, keepdims=True)
    ssq_sc[...] += jnp.sum(x * x, axis=1, keepdims=True)

    @pl.when(jnp.logical_and(n == pl.num_programs(1) - 1,
                             l == pl.num_programs(2) - 1))
    def _():
        mean = sum_sc[...] * inv_count
        var = ssq_sc[...] * inv_count - mean * mean        # biased (training BN) variance
        inv_std = jax.lax.rsqrt(var + EPS)
        scale = gamma_ref[...].astype(jnp.float32) * inv_std
        scale_ref[...] = scale
        shift_ref[...] = beta_ref[...].astype(jnp.float32) - mean * scale


def _bn_apply_kernel(x_ref, res_ref, scale_ref, shift_ref, o_ref):
    # x_ref/res_ref/o_ref: (1, cb, lb)   scale/shift: (cb, 1)
    x = x_ref[0].astype(jnp.float32)
    res = res_ref[0].astype(jnp.float32)
    y = res + x * scale_ref[...] + shift_ref[...]          # (cb,1) broadcasts over lanes
    o_ref[0] = y.astype(o_ref.dtype)


def _pick_c_block(C):
    # Prefer an even number of channel blocks (megacore balance), then larger blocks.
    for prefer_even in (True, False):
        for cb in (32, 16, 8):
            if C % cb == 0 and (not prefer_even or (C // cb) % 2 == 0):
                return cb
    return C  # block == full dim is always legal


def _pick_l_block(L, max_lanes=2048):
    if L <= max_lanes:
        return L
    hi = max_lanes - (max_lanes % 128)
    for lb in range(hi, 127, -128):
        if L % lb == 0:
            return lb
    # TODO(synk): L has no multiple-of-128 divisor (e.g. 56*56=3136); fall back
    # to full rows (still only ~cb*L*4 bytes per block for these shapes).
    return L


@jax.jit
def batchnorm_add(x22, x15, gamma, beta):
    """Returns x15 + BatchNorm2d(x22) using training-mode batch statistics."""
    N, C, H, W = x22.shape
    L = H * W

    # Free views only (no HBM round-trips).
    x_ncl = x22.reshape(N, C, L)
    r_ncl = x15.reshape(N, C, L)
    g = gamma.reshape(C, 1).astype(jnp.float32)
    b = beta.reshape(C, 1).astype(jnp.float32)

    cb = _pick_c_block(C)
    lb = _pick_l_block(L)
    assert C % cb == 0 and L % lb == 0
    nl = L // lb
    inv_count = 1.0 / float(N * L)

    vmem_limit = 32 * 1024 * 1024  # explicit scoped-VMEM budget, safe on v5e/v6e/v7x

    # ---- Pass 1: per-channel batch stats -> (scale, shift) ----
    scale, shift = pl.pallas_call(
        functools.partial(_bn_stats_kernel, inv_count=inv_count),
        out_shape=(jax.ShapeDtypeStruct((C, 1), jnp.float32),
                   jax.ShapeDtypeStruct((C, 1), jnp.float32)),
        grid_spec=pltpu.PrefetchScalarGridSpec(
            num_scalar_prefetch=0,
            grid=(C // cb, N, nl),
            in_specs=[
                pl.BlockSpec((1, cb, lb), lambda c, n, l: (n, c, l)),
                pl.BlockSpec((cb, 1), lambda c, n, l: (c, 0)),
                pl.BlockSpec((cb, 1), lambda c, n, l: (c, 0)),
            ],
            out_specs=[
                pl.BlockSpec((cb, 1), lambda c, n, l: (c, 0)),
                pl.BlockSpec((cb, 1), lambda c, n, l: (c, 0)),
            ],
            scratch_shapes=[pltpu.VMEM((cb, 1), jnp.float32),
                            pltpu.VMEM((cb, 1), jnp.float32)],
        ),
        compiler_params=pltpu.CompilerParams(
            dimension_semantics=("parallel", "arbitrary", "arbitrary"),
            vmem_limit_bytes=vmem_limit,
        ),
    )(x_ncl, g, b)

    # ---- Pass 2: out = res + x * scale + shift (fully parallel) ----
    out_ncl = pl.pallas_call(
        _bn_apply_kernel,
        out_shape=jax.ShapeDtypeStruct((N, C, L), x22.dtype),
        grid_spec=pltpu.PrefetchScalarGridSpec(
            num_scalar_prefetch=0,
            grid=(N, C // cb, nl),
            in_specs=[
                pl.BlockSpec((1, cb, lb), lambda n, c, l: (n, c, l)),
                pl.BlockSpec((1, cb, lb), lambda n, c, l: (n, c, l)),
                pl.BlockSpec((cb, 1), lambda n, c, l: (c, 0)),
                pl.BlockSpec((cb, 1), lambda n, c, l: (c, 0)),
            ],
            out_specs=pl.BlockSpec((1, cb, lb), lambda n, c, l: (n, c, l)),
        ),
        compiler_params=pltpu.CompilerParams(
            dimension_semantics=("parallel", "parallel", "parallel"),
            vmem_limit_bytes=vmem_limit,
        ),
    )(x_ncl, r_ncl, scale, shift)

    return out_ncl.reshape(N, C, H, W)


if __name__ == "__main__":
    # Small shapes consistent with the module: channel dim must be 96
    # (BatchNorm2d(96)); batch=2, spatial=8x8 instead of 1x56x56.
    N, C, H, W = 2, 96, 8, 8

    key = jax.random.PRNGKey(0)
    k1, k2 = jax.random.split(key)
    x22 = jax.random.normal(k1, (N, C, H, W), dtype=jnp.float32)
    x15 = jax.random.normal(k2, (N, C, H, W), dtype=jnp.float32)

    # BatchNorm2d default affine init: weight = 1, bias = 0.
    gamma = jnp.ones((C,), dtype=jnp.float32)
    beta = jnp.zeros((C,), dtype=jnp.float32)

    out = batchnorm_add(x22, x15, gamma, beta)
    out = jax.block_until_ready(out)

    # Pure-JAX reference (training-mode BN + residual add).
    # TODO(synk): running_mean/running_var momentum update (module side effect)
    # is not produced; only the forward output is computed.
    mean = jnp.mean(x22, axis=(0, 2, 3), keepdims=True)
    var = jnp.mean((x22 - mean) ** 2, axis=(0, 2, 3), keepdims=True)
    ref = x15 + (x22 - mean) * jax.lax.rsqrt(var + EPS) * gamma.reshape(1, C, 1, 1) \
          + beta.reshape(1, C, 1, 1)
    assert jnp.allclose(out, ref, atol=1e-5, rtol=1e-5), "mismatch vs reference"

    print("KERNEL_OK")
</pallas_src>

<mosaic_0001>
module attributes {stable_mosaic.version = 11 : i64} {
  func.func @_bn_apply_kernel(%arg0: i32, %arg1: i32, %arg2: i32, %arg3: memref<1x16x64xf32, #tpu.memory_space<vmem>>, %arg4: memref<1x16x64xf32, #tpu.memory_space<vmem>>, %arg5: memref<16x1xf32, #tpu.memory_space<vmem>>, %arg6: memref<16x1xf32, #tpu.memory_space<vmem>>, %arg7: memref<1x16x64xf32, #tpu.memory_space<vmem>>) attributes {dimension_semantics = [#tpu.dimension_semantics<parallel>, #tpu.dimension_semantics<parallel>, #tpu.dimension_semantics<parallel>], iteration_bounds = array<i64: 2, 6, 1>, scalar_prefetch = 0 : i64, scratch_operands = 0 : i64, tpu.core_type = #tpu.core_type<tc>, window_params = [{transform_indices = @transform_0, window_bounds = array<i64: 1, 16, 64>}, {transform_indices = @transform_1, window_bounds = array<i64: 1, 16, 64>}, {transform_indices = @transform_2, window_bounds = array<i64: 16, 1>}, {transform_indices = @transform_3, window_bounds = array<i64: 16, 1>}, {transform_indices = @transform_4, window_bounds = array<i64: 1, 16, 64>}]} {
    %c0 = arith.constant 0 : index
    %c0_0 = arith.constant 0 : index
    %c0_1 = arith.constant 0 : index
    %0 = vector.load %arg3[%c0, %c0_0, %c0_1] : memref<1x16x64xf32, #tpu.memory_space<vmem>>, vector<1x16x64xf32>
    %1 = vector.shape_cast %0 : vector<1x16x64xf32> to vector<16x64xf32>
    %c0_2 = arith.constant 0 : index
    %c0_3 = arith.constant 0 : index
    %c0_4 = arith.constant 0 : index
    %2 = vector.load %arg4[%c0_2, %c0_3, %c0_4] : memref<1x16x64xf32, #tpu.memory_space<vmem>>, vector<1x16x64xf32>
    %3 = vector.shape_cast %2 : vector<1x16x64xf32> to vector<16x64xf32>
    %c0_5 = arith.constant 0 : index
    %c0_6 = arith.constant 0 : index
    %4 = vector.load %arg5[%c0_5, %c0_6] : memref<16x1xf32, #tpu.memory_space<vmem>>, vector<16x1xf32>
    %5 = vector.broadcast %4 : vector<16x1xf32> to vector<16x64xf32>
    %6 = arith.mulf %1, %5 : vector<16x64xf32>
    %7 = arith.addf %3, %6 : vector<16x64xf32>
    %c0_7 = arith.constant 0 : index
    %c0_8 = arith.constant 0 : index
    %8 = vector.load %arg6[%c0_7, %c0_8] : memref<16x1xf32, #tpu.memory_space<vmem>>, vector<16x1xf32>
    %9 = vector.broadcast %8 : vector<16x1xf32> to vector<16x64xf32>
    %10 = arith.addf %7, %9 : vector<16x64xf32>
    %c0_9 = arith.constant 0 : index
    %c0_10 = arith.constant 0 : index
    %c0_11 = arith.constant 0 : index
    %11 = vector.load %arg7[%c0_9, %c0_10, %c0_11] : memref<1x16x64xf32, #tpu.memory_space<vmem>>, vector<1x16x64xf32>
    %12 = vector.shape_cast %11 : vector<1x16x64xf32> to vector<16x64xf32>
    %13 = vector.shape_cast %10 : vector<16x64xf32> to vector<1x16x64xf32>
    tpu.vector_store %arg7[%c0_9, %c0_10, %c0_11], %13 {strides = array<i32>} : memref<1x16x64xf32, #tpu.memory_space<vmem>>, vector<1x16x64xf32>,
    return
  }
  func.func @transform_0(%arg0: i32, %arg1: i32, %arg2: i32) -> (i32, i32, i32) {
    %c0_i32 = arith.constant 0 : i32
    return %arg0, %arg1, %arg2 : i32, i32, i32
  }
  func.func @transform_1(%arg0: i32, %arg1: i32, %arg2: i32) -> (i32, i32, i32) {
    %c0_i32 = arith.constant 0 : i32
    return %arg0, %arg1, %arg2 : i32, i32, i32
  }
  func.func @transform_2(%arg0: i32, %arg1: i32, %arg2: i32) -> (i32, i32) {
    %c0_i32 = arith.constant 0 : i32
    %c0_i32_0 = arith.constant 0 : i32
    return %arg1, %c0_i32 : i32, i32
  }
  func.func @transform_3(%arg0: i32, %arg1: i32, %arg2: i32) -> (i32, i32) {
    %c0_i32 = arith.constant 0 : i32
    %c0_i32_0 = arith.constant 0 : i32
    return %arg1, %c0_i32 : i32, i32
  }
  func.func @transform_4(%arg0: i32, %arg1: i32, %arg2: i32) -> (i32, i32, i32) {
    %c0_i32 = arith.constant 0 : i32
    return %arg0, %arg1, %arg2 : i32, i32, i32
  }
}

module attributes {stable_mosaic.version = 11 : i64} {
  func.func @_bn_stats_kernel(%arg0: i32, %arg1: i32, %arg2: i32, %arg3: memref<1x16x64xf32, #tpu.memory_space<vmem>>, %arg4: memref<16x1xf32, #tpu.memory_space<vmem>>, %arg5: memref<16x1xf32, #tpu.memory_space<vmem>>, %arg6: memref<16x1xf32, #tpu.memory_space<vmem>>, %arg7: memref<16x1xf32, #tpu.memory_space<vmem>>, %arg8: memref<16x1xf32, #tpu.memory_space<vmem>>, %arg9: memref<16x1xf32, #tpu.memory_space<vmem>>) attributes {dimension_semantics = [#tpu.dimension_semantics<parallel>, #tpu.dimension_semantics<arbitrary>, #tpu.dimension_semantics<arbitrary>], iteration_bounds = array<i64: 6, 2, 1>, scalar_prefetch = 0 : i64, scratch_operands = 2 : i64, tpu.core_type = #tpu.core_type<tc>, window_params = [{transform_indices = @transform_0, window_bounds = array<i64: 1, 16, 64>}, {transform_indices = @transform_1, window_bounds = array<i64: 16, 1>}, {transform_indices = @transform_2, window_bounds = array<i64: 16, 1>}, {transform_indices = @transform_3, window_bounds = array<i64: 16, 1>}, {transform_indices = @transform_4, window_bounds = array<i64: 16, 1>}]} {
    %c0_i32 = arith.constant 0 : i32
    %0 = arith.cmpi eq, %arg1, %c0_i32 : i32
    %c0_i32_0 = arith.constant 0 : i32
    %1 = arith.cmpi eq, %arg2, %c0_i32_0 : i32
    %2 = arith.andi %0, %1 : i1
    %3 = arith.extui %2 : i1 to i32
    %c0_i32_1 = arith.constant 0 : i32
    %4 = arith.cmpi ne, %3, %c0_i32_1 : i32
    scf.if %4 {
      %cst_15 = arith.constant 0.000000e+00 : f32
      %23 = vector.broadcast %cst_15 : f32 to vector<16x1xf32>
      %c0_16 = arith.constant 0 : index
      %c0_17 = arith.constant 0 : index
      %24 = vector.load %arg8[%c0_16, %c0_17] : memref<16x1xf32, #tpu.memory_space<vmem>>, vector<16x1xf32>
      tpu.vector_store %arg8[%c0_16, %c0_17], %23 {strides = array<i32>} : memref<16x1xf32, #tpu.memory_space<vmem>>, vector<16x1xf32>,
      %cst_18 = arith.constant 0.000000e+00 : f32
      %25 = vector.broadcast %cst_18 : f32 to vector<16x1xf32>
      %c0_19 = arith.constant 0 : index
      %c0_20 = arith.constant 0 : index
      %26 = vector.load %arg9[%c0_19, %c0_20] : memref<16x1xf32, #tpu.memory_space<vmem>>, vector<16x1xf32>
      tpu.vector_store %arg9[%c0_19, %c0_20], %25 {strides = array<i32>} : memref<16x1xf32, #tpu.memory_space<vmem>>, vector<16x1xf32>,
    } else {
    }
    %c0 = arith.constant 0 : index
    %c0_2 = arith.constant 0 : index
    %c0_3 = arith.constant 0 : index
    %5 = vector.load %arg3[%c0, %c0_2, %c0_3] : memref<1x16x64xf32, #tpu.memory_space<vmem>>, vector<1x16x64xf32>
    %6 = vector.shape_cast %5 : vector<1x16x64xf32> to vector<16x64xf32>
    %c0_4 = arith.constant 0 : index
    %c0_5 = arith.constant 0 : index
    %7 = vector.load %arg8[%c0_4, %c0_5] : memref<16x1xf32, #tpu.memory_space<vmem>>, vector<16x1xf32>
    %cst = arith.constant dense<0.000000e+00> : vector<16xf32>
    %8 = vector.multi_reduction <add>, %6, %cst [1] : vector<16x64xf32> to vector<16xf32>
    %9 = vector.shape_cast %8 : vector<16xf32> to vector<16x1xf32>
    %10 = arith.addf %7, %9 : vector<16x1xf32>
    %c0_6 = arith.constant 0 : index
    %c0_7 = arith.constant 0 : index
    %11 = vector.load %arg8[%c0_6, %c0_7] : memref<16x1xf32, #tpu.memory_space<vmem>>, vector<16x1xf32>
    tpu.vector_store %arg8[%c0_6, %c0_7], %10 {strides = array<i32>} : memref<16x1xf32, #tpu.memory_space<vmem>>, vector<16x1xf32>,
    %c0_8 = arith.constant 0 : index
    %c0_9 = arith.constant 0 : index
    %12 = vector.load %arg9[%c0_8, %c0_9] : memref<16x1xf32, #tpu.memory_space<vmem>>, vector<16x1xf32>
    %13 = arith.mulf %6, %6 : vector<16x64xf32>
    %cst_10 = arith.constant dense<0.000000e+00> : vector<16xf32>
    %14 = vector.multi_reduction <add>, %13, %cst_10 [1] : vector<16x64xf32> to vector<16xf32>
    %15 = vector.shape_cast %14 : vector<16xf32> to vector<16x1xf32>
    %16 = arith.addf %12, %15 : vector<16x1xf32>
    %c0_11 = arith.constant 0 : index
    %c0_12 = arith.constant 0 : index
    %17 = vector.load %arg9[%c0_11, %c0_12] : memref<16x1xf32, #tpu.memory_space<vmem>>, vector<16x1xf32>
    tpu.vector_store %arg9[%c0_11, %c0_12], %16 {strides = array<i32>} : memref<16x1xf32, #tpu.memory_space<vmem>>, vector<16x1xf32>,
    %c1_i32 = arith.constant 1 : i32
    %18 = arith.cmpi eq, %arg1, %c1_i32 : i32
    %c0_i32_13 = arith.constant 0 : i32
    %19 = arith.cmpi eq, %arg2, %c0_i32_13 : i32
    %20 = arith.andi %18, %19 : i1
    %21 = arith.extui %20 : i1 to i32
    %c0_i32_14 = arith.constant 0 : i32
    %22 = arith.cmpi ne, %21, %c0_i32_14 : i32
    scf.if %22 {
      %c0_15 = arith.constant 0 : index
      %c0_16 = arith.constant 0 : index
      %23 = vector.load %arg8[%c0_15, %c0_16] : memref<16x1xf32, #tpu.memory_space<vmem>>, vector<16x1xf32>
      %cst_17 = arith.constant 7.812500e-03 : f32
      %24 = vector.broadcast %cst_17 : f32 to vector<16x1xf32>
      %25 = arith.mulf %23, %24 : vector<16x1xf32>
      %c0_18 = arith.constant 0 : index
      %c0_19 = arith.constant 0 : index
      %26 = vector.load %arg9[%c0_18, %c0_19] : memref<16x1xf32, #tpu.memory_space<vmem>>, vector<16x1xf32>
      %cst_20 = arith.constant 7.812500e-03 : f32
      %27 = vector.broadcast %cst_20 : f32 to vector<16x1xf32>
      %28 = arith.mulf %26, %27 : vector<16x1xf32>
      %29 = arith.mulf %25, %25 : vector<16x1xf32>
      %30 = arith.subf %28, %29 : vector<16x1xf32>
      %cst_21 = arith.constant 9.99999974E-6 : f32
      %31 = vector.broadcast %cst_21 : f32 to vector<16x1xf32>
      %32 = arith.addf %30, %31 : vector<16x1xf32>
      %33 = math.rsqrt %32 : vector<16x1xf32>
      %c0_22 = arith.constant 0 : index
      %c0_23 = arith.constant 0 : index
      %34 = vector.load %arg4[%c0_22, %c0_23] : memref<16x1xf32, #tpu.memory_space<vmem>>, vector<16x1xf32>
      %35 = arith.mulf %34, %33 : vector<16x1xf32>
      %c0_24 = arith.constant 0 : index
      %c0_25 = arith.constant 0 : index
      %36 = vector.load %arg6[%c0_24, %c0_25] : memref<16x1xf32, #tpu.memory_space<vmem>>, vector<16x1xf32>
      tpu.vector_store %arg6[%c0_24, %c0_25], %35 {strides = array<i32>} : memref<16x1xf32, #tpu.memory_space<vmem>>, vector<16x1xf32>,
      %c0_26 = arith.constant 0 : index
      %c0_27 = arith.constant 0 : index
      %37 = vector.load %arg5[%c0_26, %c0_27] : memref<16x1xf32, #tpu.memory_space<vmem>>, vector<16x1xf32>
      %38 = arith.mulf %25, %35 : vector<16x1xf32>
      %39 = arith.subf %37, %38 : vector<16x1xf32>
      %c0_28 = arith.constant 0 : index
      %c0_29 = arith.constant 0 : index
      %40 = vector.load %arg7[%c0_28, %c0_29] : memref<16x1xf32, #tpu.memory_space<vmem>>, vector<16x1xf32>
      tpu.vector_store %arg7[%c0_28, %c0_29], %39 {strides = array<i32>} : memref<16x1xf32, #tpu.memory_space<vmem>>, vector<16x1xf32>,
    } else {
    }
    return
  }
  func.func @transform_0(%arg0: i32, %arg1: i32, %arg2: i32) -> (i32, i32, i32) {
    %c0_i32 = arith.constant 0 : i32
    return %arg1, %arg0, %arg2 : i32, i32, i32
  }
  func.func @transform_1(%arg0: i32, %arg1: i32, %arg2: i32) -> (i32, i32) {
    %c0_i32 = arith.constant 0 : i32
    %c0_i32_0 = arith.constant 0 : i32
    return %arg0, %c0_i32 : i32, i32
  }
  func.func @transform_2(%arg0: i32, %arg1: i32, %arg2: i32) -> (i32, i32) {
    %c0_i32 = arith.constant 0 : i32
    %c0_i32_0 = arith.constant 0 : i32
    return %arg0, %c0_i32 : i32, i32
  }
  func.func @transform_3(%arg0: i32, %arg1: i32, %arg2: i32) -> (i32, i32) {
    %c0_i32 = arith.constant 0 : i32
    %c0_i32_0 = arith.constant 0 : i32
    return %arg0, %c0_i32 : i32, i32
  }
  func.func @transform_4(%arg0: i32, %arg1: i32, %arg2: i32) -> (i32, i32) {
    %c0_i32 = arith.constant 0 : i32
    %c0_i32_0 = arith.constant 0 : i32
    return %arg0, %c0_i32 : i32, i32
  }
}

</mosaic_0001>

<bundles_post_ra>
// kernel: batchnorm_add.3
= control target key start
LH: loop header
LB: loop body
LE: loop exit
PB: predicated region body
PF: predicated region fallthrough
CT: control target
= control target key end

     0   :  { %s669_s15 = smov 0   ;;  %s671_s16 = smov 0   ;;  %s733_s0 = inlined_call_operand.vmem [shape: f32[2,96,64], index: 0, kind: input, shape index: {}]   ;;  %s734_s1 = inlined_call_operand.vmem [shape: f32[2,96,64], index: 1, kind: input, shape index: {}]   ;;  %s735_s2 = inlined_call_operand.vmem [shape: f32[96,1], index: 2, kind: input, shape index: {}]   ;;  %s736_s3 = inlined_call_operand.vmem [shape: f32[96,1], index: 3, kind: input, shape index: {}]   ;;  %s737_s4 = inlined_call_operand.vmem [shape: f32[2,96,64], index: 4, kind: output, shape index: {}]  }
   0x1   :  { %s673_s17 = smov 0   ;;  %s675_s18 = smov 0  }
   0x2   :  { %s677_s19 = smov 0  }
   0x3 LB: > { %s29_s20 = sadd.s32 1, %s633_s17  ;;  %s33_s21 = sadd.s32 1, %s637_s18  ;;  %s641_s19 = sphi %s677_s19, %s14_s19   ;;  %s637_s18 = sphi %s675_s18, %s741_s18   ;;  %s633_s17 = sphi %s673_s17, %s740_s17   ;;  %s629_s16 = sphi %s671_s16, %s739_s16   ;;  %s625_s15 = sphi %s669_s15, %s738_s15  }
   0x4   : > { %p31_p0 = scmp.ge.s32.totalorder %s29_s20, 6  ;;  %p546_p1 = scmp.ge.s32.totalorder %s641_s19, 1 }
   0x5   : > { %p241_p2 = scmp.lt.s32.totalorder %s641_s19, 13 }
   0x6   : > { %s743_s20 = smov (%p31_p0, %s29_s20), 0  ;;  %s745_s21 = smov (!%p31_p0, %s33_s21), %s637_s18 }
   0x7   : > { %p242_p3 = pnand %p546_p1, %p241_p2  ;;  %p35_p4 = scmp.ge.s32.totalorder %s745_s21, 2 }
   0x8   : > { %s547_s22 = sshll.u32 (!%p242_p3), %s625_s15, 1  ;;  %p304_p6 = scmp.lt.s32.totalorder (!%p242_p3), %s629_s16, 1 }
   0x9   : > { %s747_s21 = smov (%p35_p4, %s745_s21), 0  ;;  %245 = sbr.rel (%p242_p3) target bundleno = 154 (0x9a), region = 36 }
   0xa   : > { %p306_p5 = scmp.lt.s32.totalorder (!%p242_p3), %s547_s22, 11 }
   0xe   : > { %v643_v0 = vmov 0   ;;  %s749_s22 = smov (!%p306_p5, %s547_s22), 11  ;;  %s751_s16 = smov (!%p304_p6, %s629_s16), 1  ;;  %vm388_vm0 = vcmask 523264  }
   0xf   : > { %602 = vset.pattern.permute.xlu1 %v643_v0  ;;  %601 = vset.pattern.permute.xlu0 %v643_v0  ;;  %s552_s23 = sshll.u32 %s749_s22, 3  ;;  %s559_s30 = smul.u32 12, %s751_s16 }
  0x10   : > { %s339_s26 = scalar_lea.vmem %s736_s3, %s552_s23  ;;  %s333_s29 = scalar_lea.vmem %s735_s2, %s552_s23 }
  0x11   : > { %v374_v1 = vld [vmem:[%s339_s26] sm:$0xff]  ;;  %v375_v3 = vld [vmem:[%s339_s26 + $0x8] sm:$0xff]  ;;  %s312_s5 = sadd.s32 %s559_s30, %s749_s22 }
  0x12   : > { %v358_v2 = vld [vmem:[%s333_s29] sm:$0xff]  ;;  %378 = vperm.xlu1 %602, %v374_v1   ;;  %v359_v4 = vld [vmem:[%s333_s29 + $0x8] sm:$0xff]  ;;  %s548_s6 = sshll.u32 %s312_s5, 3 }
  0x13   : > { %362 = vperm.xlu0 %601, %v358_v2   ;;  %s314_s9 = scalar_lea.vmem %s733_s0, %s548_s6  ;;  %s327_s12 = scalar_lea.vmem %s734_s1, %s548_s6 }
  0x14   : > { %v354_v5 = vld [vmem:[%s314_s9] sm:$0xff]  ;;  %v355_v10 = vld [vmem:[%s314_s9 + $0x8] sm:$0xff]  ;;  %s352_s15 = scalar_lea.vmem %s737_s4, %s548_s6 }
  0x15   : > { %v356_v7 = vld [vmem:[%s327_s12] sm:$0xff]  ;;  %v357_v13 = vld [vmem:[%s327_s12 + $0x8] sm:$0xff] }
  0x16   : > { %383 = vperm.xlu1 %602, %v375_v3  }
  0x17   : > { %367 = vperm.xlu0 %601, %v359_v4  }
  0x8d   : > { %v379_v9 = vpop.permute.xlu1 %378 }
  0x8e   : > { %v363_v6 = vpop.permute.xlu0 %362 }
  0x8f   : > { %v370_v8 = vmul.f32 %v363_v6, %v354_v5 }
  0x91   : > { %v372_v11 = vadd.f32 %v370_v8, %v356_v7  ;;  %v384_v17 = vpop.permute.xlu1 %383 }
  0x92   : > { %v368_v12 = vpop.permute.xlu0 %367 }
  0x93   : > { %v386_v14 = vadd.f32 %v379_v9, %v372_v11  ;;  %v371_v15 = vmul.f32 %v368_v12, %v355_v10 }
  0x95   : > { %389 = vst.msk [vmem:[%s352_s15] sm:$0xff] %vm388_vm0, %v386_v14  ;;  %v373_v16 = vadd.f32 %v371_v15, %v357_v13 }
  0x97   : > { %v387_v18 = vadd.f32 %v384_v17, %v373_v16 }
  0x99   : > { %390 = vst.msk [vmem:[%s352_s15 + $0x8] sm:$0xff] %vm388_vm0, %v387_v18 }
  0x9a PF: > { %s14_s19 = sadd.s32 1, %s641_s19   ;;  %s738_s15 = smov %s633_s17 }
  0x9b   : > { %p11_p7 = scmp.ge.s32.totalorder %s14_s19, 14   ;;  %s739_s16 = smov %s637_s18 }
  0x9c   : > { %s740_s17 = smov %s743_s20  ;;  %s741_s18 = smov %s747_s21 }
  0x9d   :  { %13 = sbr.rel (!%p11_p7) target bundleno = 3 (0x3), region = 75 }

// kernel: batchnorm_add.2
= control target key start
LH: loop header
LB: loop body
LE: loop exit
PB: predicated region body
PF: predicated region fallthrough
CT: control target
= control target key end

     0   :  { %s650_s15 = smov 0   ;;  %s652_s16 = smov 0   ;;  %s742_s0 = inlined_call_operand.vmem [shape: f32[2,96,64], index: 0, kind: input, shape index: {}]   ;;  %s743_s1 = inlined_call_operand.vmem [shape: f32[96,1], index: 1, kind: input, shape index: {}]   ;;  %s744_s2 = inlined_call_operand.vmem [shape: f32[96,1], index: 2, kind: input, shape index: {}]   ;;  %s745_s3 = inlined_call_operand.vmem [shape: f32[96,1], index: 3, kind: output, shape index: {0}]   ;;  %s746_s4 = inlined_call_operand.vmem [shape: f32[96,1], index: 4, kind: output, shape index: {1}]  }
   0x1   :  { %s654_s17 = smov 0   ;;  %s656_s18 = smov 0  }
   0x2   :  { %s658_s19 = smov 0  }
   0x3 LB: > { %s30_s20 = sadd.s32 1, %s614_s17  ;;  %s34_s21 = sadd.s32 1, %s618_s18  ;;  %s622_s19 = sphi %s658_s19, %s15_s19   ;;  %s618_s18 = sphi %s656_s18, %s750_s18   ;;  %s614_s17 = sphi %s654_s17, %s749_s17   ;;  %s610_s16 = sphi %s652_s16, %s748_s16   ;;  %s606_s15 = sphi %s650_s15, %s747_s15  }
   0x4   : > { %p32_p0 = scmp.ge.s32.totalorder %s30_s20, 2  ;;  %p521_p1 = scmp.ge.s32.totalorder %s622_s19, 1 }
   0x5   : > { %p218_p2 = scmp.lt.s32.totalorder %s622_s19, 13 }
   0x6   : > { %s752_s20 = smov (%p32_p0, %s30_s20), 0  ;;  %s754_s21 = smov (!%p32_p0, %s34_s21), %s618_s18 }
   0x7   : > { %p219_p3 = pnand %p521_p1, %p218_p2  ;;  %p36_p4 = scmp.ge.s32.totalorder %s754_s21, 6 }
   0x8   : > { %s522_s22 = sshll.u32 (!%p219_p3), %s610_s16, 1  ;;  %p267_p5 = scmp.lt.s32.totalorder (!%p219_p3), %s606_s15, 1 }
   0x9   : > { %s756_s21 = smov (%p36_p4, %s754_s21), 0  ;;  %222 = sbr.rel (%p219_p3) target bundleno = 208 (0xd0), region = 32 }
   0xa   : > { %p269_p6 = scmp.lt.s32.totalorder (!%p219_p3), %s522_s22, 11  ;;  %p303_p7 = scmp.eq.s32.totalorder (!%p219_p3), %s606_s15, 0 }
   0xe   : > { %s268_s23 = scalar_select %p267_p5, %s606_s15, 1  ;;  %vm309_vm0 = vcmask (%p303_p7), 7168   ;;  %v624_v0 = vmov (%p303_p7), 0.0  }
   0xf   : > { %s758_s22 = smov (!%p269_p6, %s522_s22), 11  ;;  %310 = vst.msk [vmem:[#allocation2] sm:$0xff] (%p303_p7), %vm309_vm0, %v624_v0  ;;  %311 = vst.msk [vmem:[#allocation2 + $0x8] sm:$0xff] (%p303_p7), %vm309_vm0, %v624_v0 }
  0x10   : > { %s538_s24 = smul.u32 12, %s268_s23  ;;  %s525_s25 = sshll.u32 %s758_s22, 3  ;;  %312 = vst.msk [vmem:[#allocation3] sm:$0xff] (%p303_p7), %vm309_vm0, %v624_v0  ;;  %313 = vst.msk [vmem:[#allocation3 + $0x8] sm:$0xff] (%p303_p7), %vm309_vm0, %v624_v0 }
  0x11   : > { %s688_s29 = scalar_lea.vmem %s743_s1, %s525_s25  ;;  %s693_s7 = scalar_lea.vmem %s744_s2, %s525_s25 }
  0x12   : > { %s275_s26 = sadd.s32 %s538_s24, %s758_s22  ;;  %s701_s13 = scalar_lea.vmem %s745_s3, %s525_s25 }
  0x13   : > { %s523_s30 = sshll.u32 %s275_s26, 3  ;;  %s706_s22 = scalar_lea.vmem %s746_s4, %s525_s25 }
  0x14   : > { %s277_s10 = scalar_lea.vmem %s742_s0, %s523_s30  ;;  %308 = sbr.rel (!%p303_p7) target bundleno = 25 (0x19), region = 36 }
  0x19 PF: > { %v314_v1 = vld [vmem:[%s277_s10] sm:$0xff]  ;;  %vm318_vm1 = vcmask 523264   ;;  %v315_v2 = vld [vmem:[%s277_s10 + $0x8] sm:$0xff]  ;;  %p344_p8 = scmp.eq.s32.totalorder %s606_s15, 1  ;;  %vm327_vm2 = vcmask 7168   ;;  %v330_v10 = vld [vmem:[#allocation3] sm:$0xff] }
  0x1a   : > { %v332_v3 = vmul.f32 %v314_v1, %v314_v1  ;;  %v319_v4 = vsel %vm318_vm1, %v314_v1, 0.0  ;;  %v333_v5 = vmul.f32 %v315_v2, %v315_v2  ;;  %v322_v7 = vsel %vm318_vm1, %v315_v2, 0.0  ;;  %v316_v9 = vld [vmem:[#allocation2] sm:$0xff]  ;;  %v317_v14 = vld [vmem:[#allocation2 + $0x8] sm:$0xff]  ;;  %v331_v16 = vld [vmem:[#allocation3 + $0x8] sm:$0xff] }
  0x1b   : > { %320 = vadd.xlane.f32.xlu0 %v319_v4  ;;  %v365_v35 = vld [vmem:[%s688_s29] sm:$0xff] (%p344_p8)  ;;  %v366_v36 = vld [vmem:[%s688_s29 + $0x8] sm:$0xff] (%p344_p8) }
  0x1c   : > { %v334_v6 = vsel %vm318_vm1, %v332_v3, 0.0  ;;  %v337_v8 = vsel %vm318_vm1, %v333_v5, 0.0  ;;  %v371_v41 = vld [vmem:[%s693_s7] sm:$0xff] (%p344_p8)  ;;  %v372_v43 = vld [vmem:[%s693_s7 + $0x8] sm:$0xff] (%p344_p8) }
  0x1d   : > { %335 = vadd.xlane.f32.xlu1 %v334_v6 }
  0x1f   : > { %323 = vadd.xlane.f32.xlu0 %v322_v7 }
  0x21   : > { %338 = vadd.xlane.f32.xlu1 %v337_v8 }
  0xa4   : > { %v321_v11 = vpop.xlane.xlu0 %320 }
  0xa5   : > { %v325_v12 = vadd.f32 %v321_v11, %v316_v9 }
  0xa6   : > { %v336_v13 = vpop.xlane.xlu1 %335 }
  0xa7   : > { %v340_v15 = vadd.f32 %v336_v13, %v330_v10  ;;  %328 = vst.msk [vmem:[#allocation2] sm:$0xff] %vm327_vm2, %v325_v12 }
  0xa8   : > { %v324_v17 = vpop.xlane.xlu0 %323 }
  0xa9   : > { %342 = vst.msk [vmem:[#allocation3] sm:$0xff] %vm327_vm2, %v340_v15  ;;  %v326_v18 = vadd.f32 %v324_v17, %v317_v14  ;;  %348 = sbr.rel (!%p344_p8) target bundleno = 208 (0xd0), region = 40 }
  0xaa   : > { %v339_v19 = vpop.xlane.xlu1 %338 }
  0xab   : > { %v341_v20 = vadd.f32 %v339_v19, %v331_v16  ;;  %329 = vst.msk [vmem:[#allocation2 + $0x8] sm:$0xff] %vm327_vm2, %v326_v18 }
  0xad   : > { %343 = vst.msk [vmem:[#allocation3 + $0x8] sm:$0xff] %vm327_vm2, %v341_v20 }
  0xae   : > { %v349_v21 = vld [vmem:[#allocation2] sm:$0xff] }
  0xaf   : > { %v351_v23 = vmul.f32 0.0078125, %v349_v21 }
  0xb0   : > { %v353_v22 = vld [vmem:[#allocation3] sm:$0xff] }
  0xb1   : > { %v355_v24 = vmul.f32 0.0078125, %v353_v22  ;;  %v357_v29 = vmul.f32 %v351_v23, %v351_v23 }
  0xb2   : > { %v350_v25 = vld [vmem:[#allocation2 + $0x8] sm:$0xff] }
  0xb3   : > { %v352_v27 = vmul.f32 0.0078125, %v350_v25  ;;  %v359_v31 = vsub.f32 %v355_v24, %v357_v29 }
  0xb4   : > { %v354_v26 = vld [vmem:[#allocation3 + $0x8] sm:$0xff] }
  0xb5   : > { %v356_v28 = vmul.f32 0.0078125, %v354_v26  ;;  %v358_v30 = vmul.f32 %v352_v27, %v352_v27  ;;  %v361_v33 = vadd.f32 1e-05, %v359_v31 }
  0xb7   : > { %v360_v32 = vsub.f32 %v356_v28, %v358_v30  ;;  %580 = vrsqrt.f32 %v361_v33 }
  0xb9   : > { %v362_v34 = vadd.f32 1e-05, %v360_v32 }
  0xbb   : > { %582 = vrsqrt.f32 %v362_v34 }
  0xc4   : > { %v581_v37 = vpop.eup %580 }
  0xc5   : > { %v367_v39 = vmul.f32 %v581_v37, %v365_v35 }
  0xc7   : > { %369 = vst.msk [vmem:[%s701_s13] sm:$0xff] %vm327_vm2, %v367_v39  ;;  %v373_v42 = vmul.f32 %v367_v39, %v351_v23 }
  0xc8   : > { %v583_v38 = vpop.eup %582 }
  0xc9   : > { %v368_v40 = vmul.f32 %v583_v38, %v366_v36  ;;  %v375_v45 = vsub.f32 %v371_v41, %v373_v42 }
  0xcb   : > { %370 = vst.msk [vmem:[%s701_s13 + $0x8] sm:$0xff] %vm327_vm2, %v368_v40  ;;  %v374_v44 = vmul.f32 %v368_v40, %v352_v27  ;;  %377 = vst.msk [vmem:[%s706_s22] sm:$0xff] %vm327_vm2, %v375_v45 }
  0xcd   : > { %v376_v46 = vsub.f32 %v372_v43, %v374_v44 }
  0xcf   : > { %378 = vst.msk [vmem:[%s706_s22 + $0x8] sm:$0xff] %vm327_vm2, %v376_v46 }
  0xd0 PF: > { %s15_s19 = sadd.s32 1, %s622_s19   ;;  %s747_s15 = smov %s614_s17 }
  0xd1   : > { %p12_p9 = scmp.ge.s32.totalorder %s15_s19, 14   ;;  %s748_s16 = smov %s618_s18 }
  0xd2   : > { %s749_s17 = smov %s752_s20  ;;  %s750_s18 = smov %s756_s21 }
  0xd3   :  { %14 = sbr.rel (!%p12_p9) target bundleno = 3 (0x3), region = 88 }

</bundles_post_ra>
